<compile_context>
chip_gen: v7x
topology: tpu7x:2x2x1
jax: 0.10.0
libtpu: 0.0.40
codegen_flags: <defaults>
</compile_context>

<pallas_src>
import functools
import math

import numpy as np
import jax
import jax.numpy as jnp
from jax.experimental import pallas as pl
from jax.experimental.pallas import tpu as pltpu

# ----------------------------- configuration -----------------------------
EMBED_DIM = 32          # output_dim / joint feature dim
IMAGE_RES = 16
PATCH = 8
VISION_WIDTH = 64
VISION_LAYERS = 1
VISION_HEADS = max(VISION_WIDTH // 64, 1)   # = 1
HOI_TOKEN_LENGTH = 5
CONTEXT_LENGTH = 16
VOCAB_SIZE = 100
T_WIDTH = 32
T_HEADS = 4
T_LAYERS = 1
PREFIX_LEN = 8
CONJUN_LEN = 4
GRID = IMAGE_RES // PATCH
NPATCH = GRID * GRID

NEG_INF = -1e30         # large finite negative (avoids NaN from all -inf rows)
LN_EPS = 1e-5


def _zeros_idx(ndim):
    return lambda i: (0,) * ndim


def _block(shape):
    return pl.BlockSpec(shape, _zeros_idx(len(shape)))


def _ln_math(x, g, b):
    """LayerNorm over the last dim; g/b broadcast from (1, D)."""
    mu = jnp.mean(x, axis=-1, keepdims=True)
    xc = x - mu
    var = jnp.mean(xc * xc, axis=-1, keepdims=True)
    return xc * jax.lax.rsqrt(var + LN_EPS) * g + b


_ARB = pltpu.CompilerParams(dimension_semantics=("arbitrary",))


# ----------------------------- Pallas kernels -----------------------------
@functools.lru_cache(maxsize=None)
def _matmul_call(M, K, N):
    """out = x @ w   (no bias / activation; used for the conv1 patchify)."""
    def kernel(x_ref, w_ref, o_ref):
        o_ref[...] = jnp.dot(x_ref[...], w_ref[...],
                             preferred_element_type=jnp.float32)

    call = pl.pallas_call(
        kernel,
        out_shape=jax.ShapeDtypeStruct((M, N), jnp.float32),
        grid=(1,),
        in_specs=[_block((M, K)), _block((K, N))],
        out_specs=_block((M, N)),
    )
    return jax.jit(call)


@functools.lru_cache(maxsize=None)
def _layernorm_call(M, D):
    def kernel(x_ref, g_ref, b_ref, o_ref):
        o_ref[...] = _ln_math(x_ref[...], g_ref[...], b_ref[...])

    call = pl.pallas_call(
        kernel,
        out_shape=jax.ShapeDtypeStruct((M, D), jnp.float32),
        grid=(1,),
        in_specs=[_block((M, D)), _block((1, D)), _block((1, D))],
        out_specs=_block((M, D)),
    )
    return jax.jit(call)


@functools.lru_cache(maxsize=None)
def _ln_linear_call(M, K, N, has_bias):
    """out = LayerNorm(x) @ w (+ b)   -- fused ln_post+proj / ln_final+text_proj."""
    def kernel(*refs):
        if has_bias:
            x_ref, g_ref, b_ref, w_ref, bias_ref, o_ref = refs
        else:
            x_ref, g_ref, b_ref, w_ref, o_ref = refs
        xn = _ln_math(x_ref[...], g_ref[...], b_ref[...])
        acc = jnp.dot(xn, w_ref[...], preferred_element_type=jnp.float32)
        if has_bias:
            acc = acc + bias_ref[...]
        o_ref[...] = acc

    in_specs = [_block((M, K)), _block((1, K)), _block((1, K)), _block((K, N))]
    if has_bias:
        in_specs.append(_block((1, N)))
    call = pl.pallas_call(
        kernel,
        out_shape=jax.ShapeDtypeStruct((M, N), jnp.float32),
        grid=(1,),
        in_specs=in_specs,
        out_specs=_block((M, N)),
    )
    return jax.jit(call)


@functools.lru_cache(maxsize=None)
def _mlp_block_call(M, E, F):
    """y = x + c_proj(QuickGELU(c_fc(LN(x))))   (whole CLIP MLP block fused)."""
    def kernel(x_ref, g_ref, b_ref, w1_ref, b1_ref, w2_ref, b2_ref, o_ref):
        x = x_ref[...]
        xn = _ln_math(x, g_ref[...], b_ref[...])
        h = jnp.dot(xn, w1_ref[...], preferred_element_type=jnp.float32) + b1_ref[...]
        h = h * jax.nn.sigmoid(1.702 * h)
        o_ref[...] = x + jnp.dot(h, w2_ref[...],
                                 preferred_element_type=jnp.float32) + b2_ref[...]

    call = pl.pallas_call(
        kernel,
        out_shape=jax.ShapeDtypeStruct((M, E), jnp.float32),
        grid=(1,),
        in_specs=[_block((M, E)), _block((1, E)), _block((1, E)),
                  _block((E, F)), _block((1, F)),
                  _block((F, E)), _block((1, E))],
        out_specs=_block((M, E)),
    )
    return jax.jit(call)


@functools.lru_cache(maxsize=None)
def _self_attn_block_call(N, L, E, H, has_attn_mask, has_kpm):
    """y = x + out_proj(MHA(LN(x)))  (single kernel; x flattened to (N*L, E))."""
    dh = E // H
    scale = 1.0 / math.sqrt(dh)
    M = N * L

    def kernel(*refs):
        it = iter(refs)
        x_ref = next(it); g_ref = next(it); bln_ref = next(it)
        wqkv_ref = next(it); bqkv_ref = next(it)
        wo_ref = next(it); bo_ref = next(it)
        am_ref = next(it) if has_attn_mask else None
        kpm_ref = next(it) if has_kpm else None
        o_ref = next(it)

        x = x_ref[...]                                         # (M, E)
        xn = _ln_math(x, g_ref[...], bln_ref[...])
        qkv = jnp.dot(xn, wqkv_ref[...],
                      preferred_element_type=jnp.float32) + bqkv_ref[...]   # (M, 3E)
        wo = wo_ref[...]
        bo = bo_ref[...]
        am = am_ref[...] if has_attn_mask else None
        kpm = kpm_ref[...] if has_kpm else None

        for n in range(N):
            r0, r1 = n * L, (n + 1) * L
            qkv_n = qkv[r0:r1, :]
            head_out = []
            for h in range(H):
                q = qkv_n[:, h * dh:(h + 1) * dh] * scale
                k = qkv_n[:, E + h * dh:E + (h + 1) * dh]
                v = qkv_n[:, 2 * E + h * dh:2 * E + (h + 1) * dh]
                s = jnp.einsum("qd,kd->qk", q, k,
                               preferred_element_type=jnp.float32)          # (L, L)
                if has_attn_mask:
                    s = s + am
                if has_kpm:
                    s = s + kpm[n:n + 1, :]
                m = jnp.max(s, axis=-1, keepdims=True)
                e = jnp.exp(s - m)
                p = e * pl.reciprocal(jnp.sum(e, axis=-1, keepdims=True), approx=True)
                head_out.append(jnp.dot(p, v, preferred_element_type=jnp.float32))
            attn = head_out[0] if H == 1 else jnp.concatenate(head_out, axis=-1)
            o_ref[r0:r1, :] = x[r0:r1, :] + jnp.dot(
                attn, wo, preferred_element_type=jnp.float32) + bo

    in_specs = [_block((M, E)), _block((1, E)), _block((1, E)),
                _block((E, 3 * E)), _block((1, 3 * E)),
                _block((E, E)), _block((1, E))]
    if has_attn_mask:
        in_specs.append(_block((L, L)))
    if has_kpm:
        in_specs.append(_block((N, L)))
    call = pl.pallas_call(
        kernel,
        out_shape=jax.ShapeDtypeStruct((M, E), jnp.float32),
        grid=(1,),
        in_specs=in_specs,
        out_specs=_block((M, E)),
        compiler_params=_ARB,
    )
    return jax.jit(call)


@functools.lru_cache(maxsize=None)
def _cross_attn_block_call(N, Lq, Lk, E, H, has_kpm, need_weights):
    """y = xq + out_proj(MHA(LN(xq), LN(xkv)))  (+ averaged attention weights)."""
    dh = E // H
    scale = 1.0 / math.sqrt(dh)
    Mq, Mk = N * Lq, N * Lk

    def kernel(*refs):
        it = iter(refs)
        xq_ref = next(it); xkv_ref = next(it)
        g_ref = next(it); bln_ref = next(it)
        wq_ref = next(it); bq_ref = next(it)
        wkv_ref = next(it); bkv_ref = next(it)
        wo_ref = next(it); bo_ref = next(it)
        kpm_ref = next(it) if has_kpm else None
        o_ref = next(it)
        w_ref = next(it) if need_weights else None

        xq = xq_ref[...]
        g = g_ref[...]
        bln = bln_ref[...]
        q_all = jnp.dot(_ln_math(xq, g, bln), wq_ref[...],
                        preferred_element_type=jnp.float32) + bq_ref[...]    # (Mq, E)
        kv_all = jnp.dot(_ln_math(xkv_ref[...], g, bln), wkv_ref[...],
                         preferred_element_type=jnp.float32) + bkv_ref[...]  # (Mk, 2E)
        wo = wo_ref[...]
        bo = bo_ref[...]
        kpm = kpm_ref[...] if has_kpm else None
        inv_h = 1.0 / H

        for n in range(N):
            q0, q1 = n * Lq, (n + 1) * Lq
            k0, k1 = n * Lk, (n + 1) * Lk
            qn = q_all[q0:q1, :]
            kvn = kv_all[k0:k1, :]
            head_out = []
            w_sum = None
            for h in range(H):
                q = qn[:, h * dh:(h + 1) * dh] * scale
                k = kvn[:, h * dh:(h + 1) * dh]
                v = kvn[:, E + h * dh:E + (h + 1) * dh]
                s = jnp.einsum("qd,kd->qk", q, k,
                               preferred_element_type=jnp.float32)           # (Lq, Lk)
                if has_kpm:
                    s = s + kpm[n:n + 1, :]
                m = jnp.max(s, axis=-1, keepdims=True)
                e = jnp.exp(s - m)
                p = e * pl.reciprocal(jnp.sum(e, axis=-1, keepdims=True), approx=True)
                head_out.append(jnp.dot(p, v, preferred_element_type=jnp.float32))
                if need_weights:
                    w_sum = p if w_sum is None else w_sum + p
            attn = head_out[0] if H == 1 else jnp.concatenate(head_out, axis=-1)
            o_ref[q0:q1, :] = xq[q0:q1, :] + jnp.dot(
                attn, wo, preferred_element_type=jnp.float32) + bo
            if need_weights:
                w_ref[n] = w_sum * inv_h

    in_specs = [_block((Mq, E)), _block((Mk, E)),
                _block((1, E)), _block((1, E)),
                _block((E, E)), _block((1, E)),
                _block((E, 2 * E)), _block((1, 2 * E)),
                _block((E, E)), _block((1, E))]
    if has_kpm:
        in_specs.append(_block((N, Lk)))
    if need_weights:
        out_shape = (jax.ShapeDtypeStruct((Mq, E), jnp.float32),
                     jax.ShapeDtypeStruct((N, Lq, Lk), jnp.float32))
        out_specs = (_block((Mq, E)), _block((N, Lq, Lk)))
    else:
        out_shape = jax.ShapeDtypeStruct((Mq, E), jnp.float32)
        out_specs = _block((Mq, E))
    call = pl.pallas_call(
        kernel,
        out_shape=out_shape,
        grid=(1,),
        in_specs=in_specs,
        out_specs=out_specs,
        compiler_params=_ARB,
    )
    return jax.jit(call)


@functools.lru_cache(maxsize=None)
def _heads_call(M, E, F, N):
    """The three DETR MLP heads fused into one lane-dense 3-layer MLP."""
    def kernel(x_ref, w1_ref, b1_ref, w2_ref, b2_ref, w3_ref, b3_ref, o_ref):
        x = x_ref[...]
        h = jnp.maximum(jnp.dot(x, w1_ref[...],
                                preferred_element_type=jnp.float32) + b1_ref[...], 0.0)
        h = jnp.maximum(jnp.dot(h, w2_ref[...],
                                preferred_element_type=jnp.float32) + b2_ref[...], 0.0)
        o_ref[...] = jnp.dot(h, w3_ref[...],
                             preferred_element_type=jnp.float32) + b3_ref[...]

    call = pl.pallas_call(
        kernel,
        out_shape=jax.ShapeDtypeStruct((M, N), jnp.float32),
        grid=(1,),
        in_specs=[_block((M, E)), _block((E, F)), _block((1, F)),
                  _block((F, F)), _block((1, F)),
                  _block((F, N)), _block((1, N))],
        out_specs=_block((M, N)),
    )
    return jax.jit(call)


@functools.lru_cache(maxsize=None)
def _bbox_call(M, W):
    """bbox_score (linear) + bbox_embed (3-layer MLP + sigmoid) fused."""
    def kernel(x_ref, ws_ref, bs_ref, w1_ref, b1_ref, w2_ref, b2_ref,
               w3_ref, b3_ref, score_ref, box_ref):
        x = x_ref[...]
        score_ref[...] = jnp.dot(x, ws_ref[...],
                                 preferred_element_type=jnp.float32) + bs_ref[...]
        h = jnp.maximum(jnp.dot(x, w1_ref[...],
                                preferred_element_type=jnp.float32) + b1_ref[...], 0.0)
        h = jnp.maximum(jnp.dot(h, w2_ref[...],
                                preferred_element_type=jnp.float32) + b2_ref[...], 0.0)
        box_ref[...] = jax.nn.sigmoid(
            jnp.dot(h, w3_ref[...], preferred_element_type=jnp.float32) + b3_ref[...])

    call = pl.pallas_call(
        kernel,
        out_shape=(jax.ShapeDtypeStruct((M, 1), jnp.float32),
                   jax.ShapeDtypeStruct((M, 8), jnp.float32)),
        grid=(1,),
        in_specs=[_block((M, W)), _block((W, 1)), _block((1, 1)),
                  _block((W, W)), _block((1, W)),
                  _block((W, W)), _block((1, W)),
                  _block((W, 8)), _block((1, 8))],
        out_specs=(_block((M, 1)), _block((M, 8))),
    )
    return jax.jit(call)


@functools.lru_cache(maxsize=None)
def _logits_call(Rv, Rt, E, scale):
    """L2-normalize both sides and compute all CLIP similarity logits at once."""
    def kernel(v_ref, t_ref, lu_ref, ls_ref):
        v = v_ref[...]
        t = t_ref[...]
        vn = v * jax.lax.rsqrt(jnp.sum(v * v, axis=-1, keepdims=True) + 1e-12)
        tn = t * jax.lax.rsqrt(jnp.sum(t * t, axis=-1, keepdims=True) + 1e-12)
        lu = jnp.einsum("ve,te->vt", vn, tn, preferred_element_type=jnp.float32)
        lu_ref[...] = lu
        ls_ref[...] = lu * scale

    call = pl.pallas_call(
        kernel,
        out_shape=(jax.ShapeDtypeStruct((Rv, Rt), jnp.float32),
                   jax.ShapeDtypeStruct((Rv, Rt), jnp.float32)),
        grid=(1,),
        in_specs=[_block((Rv, E)), _block((Rt, E))],
        out_specs=(_block((Rv, Rt)), _block((Rv, Rt))),
    )
    return jax.jit(call)


# ----------------------------- block wrappers -----------------------------
def self_attn_block(x, ln, ap, heads, attn_mask=None, kpm=None):
    N, L, E = x.shape
    call = _self_attn_block_call(int(N), int(L), int(E), int(heads),
                                 attn_mask is not None, kpm is not None)
    args = [x.reshape(N * L, E), ln["g"], ln["b"],
            ap["wqkv"], ap["bqkv"], ap["wo"], ap["bo"]]
    if attn_mask is not None:
        args.append(attn_mask)
    if kpm is not None:
        args.append(kpm)
    return call(*args).reshape(N, L, E)


def cross_attn_block(xq, xkv, ln, ap, heads, kpm=None, need_weights=False):
    N, Lq, E = xq.shape
    Lk = xkv.shape[1]
    call = _cross_attn_block_call(int(N), int(Lq), int(Lk), int(E), int(heads),
                                  kpm is not None, need_weights)
    args = [xq.reshape(N * Lq, E), xkv.reshape(N * Lk, E), ln["g"], ln["b"],
            ap["wq"], ap["bq"], ap["wkv"], ap["bkv"], ap["wo"], ap["bo"]]
    if kpm is not None:
        args.append(kpm)
    out = call(*args)
    if need_weights:
        o, w = out
        return o.reshape(N, Lq, E), w
    return out.reshape(N, Lq, E)


def mlp_block(x, ln, mp):
    shp = x.shape
    E = shp[-1]
    F = mp["w1"].shape[1]
    M = int(np.prod(shp[:-1]))
    y = _mlp_block_call(M, int(E), int(F))(
        x.reshape(M, E), ln["g"], ln["b"], mp["w1"], mp["b1"], mp["w2"], mp["b2"])
    return y.reshape(shp)


def residual_attention_block(x, p, heads, attn_mask):
    """CLIP text ResidualAttentionBlock (fused attn block + fused MLP block)."""
    x = self_attn_block(x, p["ln1"], p["attn"], heads, attn_mask=attn_mask)
    x = mlp_block(x, p["ln2"], p["mlp"])
    return x


def hoi_res_block(image, hoi, kpm_cross, kpm_self, p, parse_mask, heads):
    """HOIResidualAttentionBlock (batch-first streams; dropouts are identity)."""
    # [HOI] x [CLS+PATCH] cross-attention (only place that needs attn weights).
    hoi_new, attn_map = cross_attn_block(hoi, image, p["ln1"], p["cross"], heads,
                                         kpm=kpm_cross, need_weights=True)
    hoi_new = mlp_block(hoi_new, p["ln2"], p["mlp"])
    # [CLS+PATCH] self-attention (uses LN of the *original* image stream).
    image_new = self_attn_block(image, p["ln1"], p["self"], heads, kpm=kpm_self)
    image_new = mlp_block(image_new, p["ln2"], p["mlp"])
    # [HOI] x [CLS+HOI] sequential parsing.
    x = jnp.concatenate([image_new[:, :1], hoi_new], axis=1)
    x = self_attn_block(x, p["hoi_ln1"], p["parse"], heads, attn_mask=parse_mask)
    return image_new, x[:, 1:], attn_map


# ----------------------------- vision encoder -----------------------------
def interpolate_pos_embedding(pos_embed, mask_np):
    bs, h, w = mask_np.shape
    npatch = pos_embed.shape[0] - 1
    dim = pos_embed.shape[1]
    not_mask = ~mask_np
    ori_h = not_mask.cumsum(1)[:, -1, 0]
    ori_w = not_mask.cumsum(2)[:, 0, -1]
    class_pos = pos_embed[0]
    patch_pos = pos_embed[1:]
    g = int(math.sqrt(npatch))
    gh0, gw0 = h // PATCH, w // PATCH
    sizes = [(int(int(ori_h[i]) // PATCH + 0.1), int(int(ori_w[i]) // PATCH + 0.1))
             for i in range(bs)]
    if all(s == (g, g) for s in sizes) and (gh0, gw0) == (g, g):
        # all-valid mask: same-size interpolation is identity; just broadcast.
        out = jnp.broadcast_to(patch_pos.reshape(1, npatch, dim), (bs, npatch, dim))
    else:
        # TODO(synk): general padded-mask path approximates PyTorch bicubic.
        grid = patch_pos.reshape(g, g, dim)
        out = jnp.zeros((bs, gh0, gw0, dim), jnp.float32)
        for i, (oh, ow) in enumerate(sizes):
            interp = jax.image.resize(grid, (oh, ow, dim), method="cubic")
            out = out.at[i, :oh, :ow, :].set(interp)
        out = out.reshape(bs, -1, dim)
    return jnp.concatenate(
        [jnp.broadcast_to(class_pos, (bs, 1, dim)), out], axis=1)


def img_to_patches(image):
    B = image.shape[0]
    x = image.reshape(B, 3, GRID, PATCH, GRID, PATCH)
    x = jnp.transpose(x, (0, 2, 4, 1, 3, 5))           # (B, gh, gw, C, ph, pw)
    return x.reshape(B, NPATCH, 3 * PATCH * PATCH)


def visual_forward(vp, image, image_mask_np):
    B = image.shape[0]
    W = VISION_WIDTH
    K = HOI_TOKEN_LENGTH
    Li = NPATCH + 1

    pos = interpolate_pos_embedding(vp["positional_embedding"], image_mask_np)

    # conv1 patchify == patch flatten + matmul against reshaped conv weight.
    patches = img_to_patches(image)
    x = _matmul_call(int(B * NPATCH), 3 * PATCH * PATCH, W)(
        patches.reshape(B * NPATCH, -1), vp["conv_w"]).reshape(B, NPATCH, W)

    # Padding masks (host numpy -> small additive float rows).
    m = (image_mask_np.astype(np.float32)
         .reshape(B, GRID, PATCH, GRID, PATCH).mean(axis=(2, 4)) != 0.0)
    mask_flatten = np.concatenate([np.ones((B, 1), bool), m.reshape(B, -1)], axis=1)
    kpm_cross = jnp.asarray(np.where(mask_flatten, NEG_INF, 0.0).astype(np.float32))
    mf_self = mask_flatten.copy()
    mf_self[:, 0] = False
    kpm_self = jnp.asarray(np.where(mf_self, NEG_INF, 0.0).astype(np.float32))

    img = jnp.concatenate(
        [jnp.broadcast_to(vp["class_embedding"], (B, 1, W)), x], axis=1) + pos
    hoi = jnp.broadcast_to(vp["hoi_token_embed"], (B, K, W)) + vp["hoi_pos_embed"]

    # ln_pre on both streams with a single launch.
    stacked = jnp.concatenate([img.reshape(B * Li, W), hoi.reshape(B * K, W)], axis=0)
    normed = _layernorm_call(int(B * Li + B * K), W)(
        stacked, vp["ln_pre"]["g"], vp["ln_pre"]["b"])
    img = normed[:B * Li].reshape(B, Li, W)
    hoi = normed[B * Li:].reshape(B, K, W)

    attn_map = None
    for blk in vp["blocks"]:
        img, hoi, attn_map = hoi_res_block(img, hoi, kpm_cross, kpm_self, blk,
                                           vp["parse_attn_mask"], VISION_HEADS)

    # ln_post + proj fused, on [image CLS rows ; hoi rows].
    post_in = jnp.concatenate([img[:, 0, :], hoi.reshape(B * K, W)], axis=0)
    proj_out = _ln_linear_call(int(B + B * K), W, EMBED_DIM, False)(
        post_in, vp["ln_post"]["g"], vp["ln_post"]["b"], vp["proj"])
    image_features = proj_out[:B]
    hoi_features_flat = proj_out[B:]
    hoi_features = hoi_features_flat.reshape(B, K, EMBED_DIM)

    # Three DETR heads fused (person | action | object along lanes).
    hp = vp["heads"]
    heads_out = _heads_call(int(B * K), EMBED_DIM,
                            int(hp["w1"].shape[1]), int(hp["w3"].shape[1]))(
        hoi_features_flat, hp["w1"], hp["b1"], hp["w2"], hp["b2"], hp["w3"], hp["b3"])
    person_features = heads_out[:, :EMBED_DIM].reshape(B, K, EMBED_DIM)
    action_features = heads_out[:, EMBED_DIM:2 * EMBED_DIM].reshape(B, K, EMBED_DIM)
    object_features = heads_out[:, 2 * EMBED_DIM:].reshape(B, K, EMBED_DIM)

    # bbox_score + bbox_embed fused.
    bp = vp["bbox"]
    scores, boxes = _bbox_call(int(B * K), W)(
        hoi.reshape(B * K, W), bp["ws"], bp["bs"], bp["w1"], bp["b1"],
        bp["w2"], bp["b2"], bp["w3"], bp["b3"])
    box_scores = scores.reshape(B, K, 1)
    pred_boxes = boxes.reshape(B, K, 8)

    return dict(image_features=image_features, hoi_features=hoi_features,
                person_features=person_features, action_features=action_features,
                object_features=object_features, pred_boxes=pred_boxes,
                box_scores=box_scores, attn_maps=attn_map)


# ----------------------------- text encoder -----------------------------
def _pair_embedding(tp, action, obj):
    action = np.asarray(action, np.int32)
    obj = np.asarray(obj, np.int32)
    la, lo = len(action), len(obj)
    remain = CONTEXT_LENGTH - PREFIX_LEN - CONJUN_LEN - la - lo
    assert remain >= 0, "text too long for context length"
    eot = CONTEXT_LENGTH - remain - 1
    token = np.concatenate([action, obj, np.zeros((remain,), np.int32)])
    te = tp["token_embedding"][jnp.asarray(token)]
    full = jnp.concatenate([te[0:1], tp["hoi_prefix"], te[1:la],
                            tp["hoi_conjun"], te[la:]], axis=0)
    return full, eot


def _aux_embedding(tp, tok):
    t = np.asarray(tok, np.int32)
    remain = CONTEXT_LENGTH - len(t)
    eot = CONTEXT_LENGTH - remain - 1
    token = np.concatenate([t, np.zeros((remain,), np.int32)])
    return tp["token_embedding"][jnp.asarray(token)], eot


def encode_texts(tp, text, aux_action_tokens, aux_object_tokens):
    """Run all three encode_text calls as ONE batched pass of the text tower."""
    groups = [[_pair_embedding(tp, a, o) for a, o in text],
              [_aux_embedding(tp, t) for t in aux_action_tokens],
              [_aux_embedding(tp, t) for t in aux_object_tokens]]
    embs = [e for g in groups for e, _ in g]
    eots = np.asarray([i for g in groups for _, i in g])
    sizes = [len(g) for g in groups]

    x = jnp.stack(embs, axis=0) + tp["positional_embedding"]       # (Ntot, Lc, Tw)
    for blk in tp["blocks"]:
        x = residual_attention_block(x, blk, T_HEADS, tp["causal_mask"])
    rows = x[jnp.arange(x.shape[0]), jnp.asarray(eots)]             # (Ntot, Tw)
    feats = _ln_linear_call(int(x.shape[0]), T_WIDTH, EMBED_DIM, False)(
        rows, tp["ln_final"]["g"], tp["ln_final"]["b"], tp["text_projection"])
    off0, off1 = sizes[0], sizes[0] + sizes[1]
    return feats[:off0], feats[off0:off1], feats[off1:]


# ----------------------------- parameters -----------------------------
class ParamGen:
    def __init__(self, seed=0):
        self.key = jax.random.PRNGKey(seed)
        self.count = 0

    def normal(self, shape, std=0.02):
        self.count += 1
        k = jax.random.fold_in(self.key, self.count)
        return std * jax.random.normal(k, shape, jnp.float32)


def ln_params(d):
    return dict(g=jnp.ones((d,), jnp.float32), b=jnp.zeros((d,), jnp.float32))


def mha_params(g, d):
    return dict(in_proj_weight=g.normal((3 * d, d)),
                in_proj_bias=jnp.zeros((3 * d,), jnp.float32),
                out_proj_weight=g.normal((d, d)),
                out_proj_bias=jnp.zeros((d,), jnp.float32))


def mlp_params(g, d):
    return dict(c_fc_w=g.normal((4 * d, d)), c_fc_b=jnp.zeros((4 * d,), jnp.float32),
                c_proj_w=g.normal((d, 4 * d)), c_proj_b=jnp.zeros((d,), jnp.float32))


def linear_params(g, out_d, in_d, std=0.02):
    return dict(w=g.normal((out_d, in_d), std), b=jnp.zeros((out_d,), jnp.float32))


def hoi_block_params(g, d):
    return dict(hoi_parse_attn=mha_params(g, d), hoi_cross_attn=mha_params(g, d),
                attn=mha_params(g, d), ln_1=ln_params(d), ln_2=ln_params(d),
                hoi_ln1=ln_params(d), hoi_ln2=ln_params(d), mlp=mlp_params(g, d))


def causal_mask(n):
    return jnp.triu(jnp.full((n, n), NEG_INF, jnp.float32), k=1)


def init_params():
    g = ParamGen(0)
    vw = VISION_WIDTH
    scale = vw ** -0.5
    e2 = 2 * EMBED_DIM
    visual = dict(
        conv1_weight=g.normal((vw, 3, PATCH, PATCH)),
        class_embedding=g.normal((vw,), scale),
        positional_embedding=g.normal((NPATCH + 1, vw), scale),
        ln_pre=ln_params(vw), ln_post=ln_params(vw),
        proj=g.normal((vw, EMBED_DIM), scale),
        hoi_token_embed=g.normal((HOI_TOKEN_LENGTH, vw), scale),
        hoi_pos_embed=g.normal((HOI_TOKEN_LENGTH, vw), scale),
        blocks=[hoi_block_params(g, vw) for _ in range(VISION_LAYERS)],
        parse_attn_mask=causal_mask(HOI_TOKEN_LENGTH + 1),
        bbox_score=linear_params(g, 1, vw),
        bbox_embed=[linear_params(g, vw, vw), linear_params(g, vw, vw),
                    linear_params(g, 8, vw)],
        my_person=[linear_params(g, e2, EMBED_DIM), linear_params(g, e2, e2),
                   linear_params(g, EMBED_DIM, e2)],
        my_action=[linear_params(g, e2, EMBED_DIM), linear_params(g, e2, e2),
                   linear_params(g, EMBED_DIM, e2)],
        my_object=[linear_params(g, e2, EMBED_DIM), linear_params(g, e2, e2),
                   linear_params(g, EMBED_DIM, e2)],
    )
    tw = T_WIDTH
    text = dict(
        token_embedding=g.normal((VOCAB_SIZE, tw), 0.02),
        positional_embedding=g.normal((CONTEXT_LENGTH, tw), 0.01),
        ln_final=ln_params(tw),
        text_projection=g.normal((tw, EMBED_DIM), tw ** -0.5),
        hoi_prefix=g.normal((PREFIX_LEN, tw), 0.01),
        hoi_conjun=g.normal((CONJUN_LEN, tw), 0.01),
        blocks=[dict(attn=mha_params(g, tw), ln_1=ln_params(tw),
                     ln_2=ln_params(tw), mlp=mlp_params(g, tw))
                for _ in range(T_LAYERS)],
        causal_mask=causal_mask(CONTEXT_LENGTH),
    )
    return dict(visual=visual, text=text, logit_scale=math.log(1.0 / 0.07))


# ------------- one-time packing to kernel-ready layouts (pre-transposed) -------------
def _prep_ln(lnp):
    d = lnp["g"].shape[0]
    return dict(g=lnp["g"].reshape(1, d), b=lnp["b"].reshape(1, d))


def _prep_self_attn(ap, e):
    wi, bi = ap["in_proj_weight"], ap["in_proj_bias"]
    return dict(wqkv=wi.T, bqkv=bi.reshape(1, 3 * e),
                wo=ap["out_proj_weight"].T, bo=ap["out_proj_bias"].reshape(1, e))


def _prep_cross_attn(ap, e):
    wi, bi = ap["in_proj_weight"], ap["in_proj_bias"]
    return dict(wq=wi[:e].T, bq=bi[:e].reshape(1, e),
                wkv=wi[e:].T, bkv=bi[e:].reshape(1, 2 * e),
                wo=ap["out_proj_weight"].T, bo=ap["out_proj_bias"].reshape(1, e))


def _prep_mlp(mp):
    return dict(w1=mp["c_fc_w"].T, b1=mp["c_fc_b"].reshape(1, -1),
                w2=mp["c_proj_w"].T, b2=mp["c_proj_b"].reshape(1, -1))


def _block_diag(mats):
    mats = [np.asarray(m, np.float32) for m in mats]
    rows = sum(m.shape[0] for m in mats)
    cols = sum(m.shape[1] for m in mats)
    out = np.zeros((rows, cols), np.float32)
    r = c = 0
    for m in mats:
        out[r:r + m.shape[0], c:c + m.shape[1]] = m
        r += m.shape[0]
        c += m.shape[1]
    return jnp.asarray(out)


def _prep_fused_heads(person, action, obj):
    heads = [person, action, obj]
    w1 = jnp.concatenate([h[0]["w"].T for h in heads], axis=1)          # (32, 192)
    b1 = jnp.concatenate([h[0]["b"] for h in heads], axis=0).reshape(1, -1)
    w2 = _block_diag([np.asarray(h[1]["w"]).T for h in heads])          # (192, 192)
    b2 = jnp.concatenate([h[1]["b"] for h in heads], axis=0).reshape(1, -1)
    w3 = _block_diag([np.asarray(h[2]["w"]).T for h in heads])          # (192, 96)
    b3 = jnp.concatenate([h[2]["b"] for h in heads], axis=0).reshape(1, -1)
    return dict(w1=w1, b1=b1, w2=w2, b2=b2, w3=w3, b3=b3)


def _prep_bbox(score, layers):
    return dict(ws=score["w"].T, bs=score["b"].reshape(1, -1),
                w1=layers[0]["w"].T, b1=layers[0]["b"].reshape(1, -1),
                w2=layers[1]["w"].T, b2=layers[1]["b"].reshape(1, -1),
                w3=layers[2]["w"].T, b3=layers[2]["b"].reshape(1, -1))


def prepare_params(params):
    v, t = params["visual"], params["text"]
    W, Tw = VISION_WIDTH, T_WIDTH
    vis_blocks = []
    for blk in v["blocks"]:
        vis_blocks.append(dict(
            ln1=_prep_ln(blk["ln_1"]), ln2=_prep_ln(blk["ln_2"]),
            hoi_ln1=_prep_ln(blk["hoi_ln1"]),
            cross=_prep_cross_attn(blk["hoi_cross_attn"], W),
            self=_prep_self_attn(blk["attn"], W),
            parse=_prep_self_attn(blk["hoi_parse_attn"], W),
            mlp=_prep_mlp(blk["mlp"])))
    visual = dict(
        conv_w=v["conv1_weight"].reshape(W, -1).T,
        class_embedding=v["class_embedding"],
        positional_embedding=v["positional_embedding"],
        hoi_token_embed=v["hoi_token_embed"],
        hoi_pos_embed=v["hoi_pos_embed"],
        ln_pre=_prep_ln(v["ln_pre"]), ln_post=_prep_ln(v["ln_post"]),
        proj=v["proj"],
        parse_attn_mask=v["parse_attn_mask"],
        blocks=vis_blocks,
        heads=_prep_fused_heads(v["my_person"], v["my_action"], v["my_object"]),
        bbox=_prep_bbox(v["bbox_score"], v["bbox_embed"]))
    txt_blocks = []
    for blk in t["blocks"]:
        txt_blocks.append(dict(ln1=_prep_ln(blk["ln_1"]), ln2=_prep_ln(blk["ln_2"]),
                               attn=_prep_self_attn(blk["attn"], Tw),
                               mlp=_prep_mlp(blk["mlp"])))
    text = dict(token_embedding=t["token_embedding"],
                positional_embedding=t["positional_embedding"],
                ln_final=_prep_ln(t["ln_final"]),
                text_projection=t["text_projection"],
                hoi_prefix=t["hoi_prefix"], hoi_conjun=t["hoi_conjun"],
                causal_mask=t["causal_mask"], blocks=txt_blocks)
    return dict(visual=visual, text=text, logit_scale=params["logit_scale"])


# ----------------------------- top-level forward -----------------------------
def hoi_detector_forward(params, image, text, aux_texts, image_mask):
    vp, tp = params["visual"], params["text"]
    vis = visual_forward(vp, image, image_mask)
    text_features, aux_action_text_features, aux_object_text_features = encode_texts(
        tp, text, aux_texts["action_token"], aux_texts["object_token"])

    B, K, E = vis["hoi_features"].shape
    BK = B * K
    Nt = text_features.shape[0]
    Na = aux_action_text_features.shape[0]
    No = aux_object_text_features.shape[0]
    logit_scale = float(np.exp(params["logit_scale"]))

    # Row-stack all visual features, row-stack all text features: one fused
    # normalize + similarity kernel; slice the pieces back out below.
    V = jnp.concatenate([vis["image_features"],
                         vis["hoi_features"].reshape(BK, E),
                         vis["person_features"].reshape(BK, E),
                         vis["action_features"].reshape(BK, E),
                         vis["object_features"].reshape(BK, E)], axis=0)
    T = jnp.concatenate([text_features, aux_object_text_features,
                         aux_action_text_features], axis=0)
    lu, ls = _logits_call(int(V.shape[0]), int(T.shape[0]), int(E), logit_scale)(V, T)

    logits_per_image = ls[:B, :Nt]
    logits_per_text = logits_per_image.T
    hoi_text_similarity = lu[B:B + BK, :Nt].reshape(B, K, Nt)
    logits_per_hoi = ls[B:B + BK, :Nt].reshape(B, K, Nt)
    logits_per_hoi_person = ls[B + BK:B + 2 * BK, Nt:Nt + No].reshape(B, K, No)
    logits_per_hoi_action = ls[B + 2 * BK:B + 3 * BK,
                               Nt + No:Nt + No + Na].reshape(B, K, Na)
    logits_per_hoi_object = ls[B + 3 * BK:B + 4 * BK, Nt:Nt + No].reshape(B, K, No)

    return {"logits_per_image": logits_per_image,
            "logits_per_text": logits_per_text,
            "logits_per_hoi": logits_per_hoi,
            "hoi_text_similarity": hoi_text_similarity,
            "logits_per_hoi_person": logits_per_hoi_person,
            "logits_per_hoi_action": logits_per_hoi_action,
            "logits_per_hoi_object": logits_per_hoi_object,
            "pred_boxes": vis["pred_boxes"],
            "box_scores": vis["box_scores"],
            "attn_maps": vis["attn_maps"]}


# ----------------------------- main -----------------------------
if __name__ == "__main__":
    key = jax.random.PRNGKey(0)
    raw_params = init_params()
    params = prepare_params(raw_params)   # one-time layout packing (pre-transposed)

    image = jax.random.normal(jax.random.fold_in(key, 123),
                              (2, 3, IMAGE_RES, IMAGE_RES), jnp.float32)
    image_mask = np.zeros((2, IMAGE_RES, IMAGE_RES), dtype=bool)   # no padding

    text = [(np.array([1, 5], np.int32), np.array([7, 9], np.int32)),
            (np.array([2, 6], np.int32), np.array([8, 3], np.int32)),
            (np.array([4], np.int32), np.array([11], np.int32))]
    aux_texts = {"action_token": [np.array([1, 5, 9], np.int32),
                                  np.array([2, 7], np.int32)],
                 "object_token": [np.array([3, 4], np.int32),
                                  np.array([10, 11, 12], np.int32)]}

    out = hoi_detector_forward(params, image, text, aux_texts, image_mask)
    jax.block_until_ready(out)
    print("KERNEL_OK")
</pallas_src>

<mosaic_0001>
module attributes {stable_mosaic.version = 11 : i64} {
  func.func @kernel(%arg0: i32, %arg1: memref<8x192xf32, #tpu.memory_space<vmem>>, %arg2: memref<192x64xf32, #tpu.memory_space<vmem>>, %arg3: memref<8x64xf32, #tpu.memory_space<vmem>>) attributes {dimension_semantics = [#tpu.dimension_semantics<arbitrary>], iteration_bounds = array<i64: 1>, scalar_prefetch = 0 : i64, scratch_operands = 0 : i64, tpu.core_type = #tpu.core_type<tc>, window_params = [{pipeline_mode = #tpu.pipeline_mode<synchronous>, transform_indices = @transform_0, window_bounds = array<i64: 8, 192>}, {pipeline_mode = #tpu.pipeline_mode<synchronous>, transform_indices = @transform_1, window_bounds = array<i64: 192, 64>}, {pipeline_mode = #tpu.pipeline_mode<synchronous>, transform_indices = @transform_2, window_bounds = array<i64: 8, 64>}]} {
    %c0 = arith.constant 0 : index
    %c0_0 = arith.constant 0 : index
    %0 = vector.load %arg1[%c0, %c0_0] : memref<8x192xf32, #tpu.memory_space<vmem>>, vector<8x192xf32>
    %c0_1 = arith.constant 0 : index
    %c0_2 = arith.constant 0 : index
    %1 = vector.load %arg2[%c0_1, %c0_2] : memref<192x64xf32, #tpu.memory_space<vmem>>, vector<192x64xf32>
    %cst = arith.constant dense<0.000000e+00> : vector<8x64xf32>
    %2 = tpu.matmul %0, %1, %cst {dimension_numbers = #tpu.dot_dimension_numbers<[1], [0], [0], [1], [0, 0, 1, 1], [], []>} : vector<8x192xf32>, vector<192x64xf32>, vector<8x64xf32> -> vector<8x64xf32>
    %c0_3 = arith.constant 0 : index
    %c0_4 = arith.constant 0 : index
    %3 = vector.load %arg3[%c0_3, %c0_4] : memref<8x64xf32, #tpu.memory_space<vmem>>, vector<8x64xf32>
    tpu.vector_store %arg3[%c0_3, %c0_4], %2 {strides = array<i32>} : memref<8x64xf32, #tpu.memory_space<vmem>>, vector<8x64xf32>,
    return
  }
  func.func @transform_0(%arg0: i32) -> (i32, i32) {
    %c0_i32 = arith.constant 0 : i32
    %c0_i32_0 = arith.constant 0 : i32
    %c0_i32_1 = arith.constant 0 : i32
    return %c0_i32, %c0_i32_0 : i32, i32
  }
  func.func @transform_1(%arg0: i32) -> (i32, i32) {
    %c0_i32 = arith.constant 0 : i32
    %c0_i32_0 = arith.constant 0 : i32
    %c0_i32_1 = arith.constant 0 : i32
    return %c0_i32, %c0_i32_0 : i32, i32
  }
  func.func @transform_2(%arg0: i32) -> (i32, i32) {
    %c0_i32 = arith.constant 0 : i32
    %c0_i32_0 = arith.constant 0 : i32
    %c0_i32_1 = arith.constant 0 : i32
    return %c0_i32, %c0_i32_0 : i32, i32
  }
}

</mosaic_0001>

<bundles_post_ra>
// kernel: tpu_custom_call.1
= control target key start
LH: loop header
LB: loop body
LE: loop exit
PB: predicated region body
PF: predicated region fallthrough
CT: control target
= control target key end

     0   :  { %v190_v3 = vmov 0.0|0.0   ;;  %vm38_vm0 = vcmask 523264   ;;  %s299_s0 = inlined_call_operand.vmem [shape: f32[8,192], index: 0, kind: input, shape index: {}]   ;;  %s300_s1 = inlined_call_operand.vmem [shape: f32[192,64], index: 1, kind: input, shape index: {}]   ;;  %s301_s2 = inlined_call_operand.hbm [shape: f32[8,64], index: 2, kind: output, shape index: {}]  }
   0x1   :  { %v14_v0 = vld [vmem:[%s300_s1] sm:$0xff]  ;;  %v15_v1 = vld [vmem:[%s300_s1 + $0x8] sm:$0xff]  ;;  %v16_v2 = vld [vmem:[%s300_s1 + $0x10] sm:$0xff]  ;;  %128 = vmatprep.subr.bf16.mxu0 %v190_v3 }
   0x2   :  { %v129_v4 = vpack.c.bf16 %v15_v1, %v14_v0  ;;  %v17_v5 = vld [vmem:[%s300_s1 + $0x18] sm:$0xff]  ;;  %v18_v7 = vld [vmem:[%s300_s1 + $0x20] sm:$0xff]  ;;  %v19_v8 = vld [vmem:[%s300_s1 + $0x28] sm:$0xff] }
   0x3   :  { %v132_v6 = vpack.c.bf16 %v17_v5, %v16_v2  ;;  %v135_v9 = vpack.c.bf16 %v19_v8, %v18_v7  ;;  %v20_v10 = vld [vmem:[%s300_s1 + $0x30] sm:$0xff]  ;;  %v21_v11 = vld [vmem:[%s300_s1 + $0x38] sm:$0xff]  ;;  %v13_v12 = vld [vmem:[%s299_s0 + $0x8] sm:$0xff] }
   0x4   :  { %130 = vmatpush1.bf16.msra.mxu0 %v129_v4 }
   0x5   :  { %131 = vmatprep.subr.bf16.mxu0 %v190_v3 }
   0x8   :  { %133 = vmatpush1.bf16.msra.mxu0 %v132_v6 }
   0x9   :  { %134 = vmatprep.subr.bf16.mxu0 %v190_v3 }
   0xa   :  { %7 = vsyncpa [#allocation3], 0  ;;  %127 = vmatprep.mubr.msk.f32.mxu0 %vm38_vm0, %v13_v12  ;;  %v138_v13 = vpack.c.bf16 %v21_v11, %v20_v10  ;;  %v22_v14 = vld [vmem:[%s300_s1 + $0x40] sm:$0xff]  ;;  %v23_v15 = vld [vmem:[%s300_s1 + $0x48] sm:$0xff]  ;;  %s191_s5 = smov [#allocation2]  }
   0xb   :  { %v141_v16 = vpack.c.bf16 %v23_v15, %v22_v14  ;;  %v24_v17 = vld [vmem:[%s300_s1 + $0x50] sm:$0xff]  ;;  %v25_v18 = vld [vmem:[%s300_s1 + $0x58] sm:$0xff]  ;;  %v26_v20 = vld [vmem:[%s300_s1 + $0x60] sm:$0xff]  ;;  %s119_s6 = sshll.u32 %s191_s5, 4  ;;  %s120_s6 = int_to_ptr.vmem [resolvable:$true] %s119_s6 }
   0xc   :  { %136 = vmatpush1.bf16.msra.mxu0 %v135_v9  ;;  %v144_v19 = vpack.c.bf16 %v25_v18, %v24_v17  ;;  %v27_v21 = vld [vmem:[%s300_s1 + $0x68] sm:$0xff]  ;;  %v28_v23 = vld [vmem:[%s300_s1 + $0x70] sm:$0xff]  ;;  %v29_v24 = vld [vmem:[%s300_s1 + $0x78] sm:$0xff]  ;;  %s166_s7 = scalar_lea.vmem %s120_s6, 128  ;;  %p171_p1 = scmp.lt.s32.totalorder %s120_s6, %s120_s6 }
   0xd   :  { %137 = vmatprep.subr.bf16.mxu0 %v190_v3  ;;  %v147_v22 = vpack.c.bf16 %v27_v21, %v26_v20  ;;  %v150_v25 = vpack.c.bf16 %v29_v24, %v28_v23  ;;  %v30_v26 = vld [vmem:[%s300_s1 + $0x80] sm:$0xff]  ;;  %v31_v27 = vld [vmem:[%s300_s1 + $0x88] sm:$0xff]  ;;  %v32_v29 = vld [vmem:[%s300_s1 + $0x90] sm:$0xff]  ;;  %p167_p0 = scmp.ne.s32.totalorder %s120_s6, %s166_s7  ;;  %p172_p2 = scmp.lt.s32.totalorder %s166_s7, %s166_s7 }
   0xe   :  { %v153_v28 = vpack.c.bf16 %v31_v27, %v30_v26  ;;  %v33_v30 = vld [vmem:[%s300_s1 + $0x98] sm:$0xff]  ;;  %v34_v32 = vld [vmem:[%s300_s1 + $0xa0] sm:$0xff]  ;;  %v35_v33 = vld [vmem:[%s300_s1 + $0xa8] sm:$0xff] }
   0xf   :  { %v156_v31 = vpack.c.bf16 %v33_v30, %v32_v29  ;;  %v159_v34 = vpack.c.bf16 %v35_v33, %v34_v32  ;;  %v36_v35 = vld [vmem:[%s300_s1 + $0xb0] sm:$0xff]  ;;  %v37_v36 = vld [vmem:[%s300_s1 + $0xb8] sm:$0xff]  ;;  %v12_v38 = vld [vmem:[%s299_s0] sm:$0xff]  ;;  %p173_p3 = por %p172_p2, %p171_p1 }
  0x10   :  { %139 = vmatpush1.bf16.msra.mxu0 %v138_v13  ;;  %v162_v37 = vpack.c.bf16 %v37_v36, %v36_v35 }
  0x11   :  { %140 = vmatprep.subr.bf16.mxu0 %v190_v3  ;;  %p174_p4 = pnand %p173_p3, %p167_p0 }
  0x14   :  { %142 = vmatpush1.bf16.msra.mxu0 %v141_v16 }
  0x15   :  { %143 = vmatprep.subr.bf16.mxu0 %v190_v3 }
  0x18   :  { %145 = vmatpush1.bf16.msra.mxu0 %v144_v19 }
  0x19   :  { %146 = vmatprep.subr.bf16.mxu0 %v190_v3 }
  0x1c   :  { %148 = vmatpush1.bf16.msra.mxu0 %v147_v22 }
  0x1d   :  { %149 = vmatprep.subr.bf16.mxu0 %v190_v3 }
  0x20   :  { %151 = vmatpush1.bf16.msra.mxu0 %v150_v25 }
  0x21   :  { %152 = vmatprep.subr.bf16.mxu0 %v190_v3 }
  0x24   :  { %154 = vmatpush1.bf16.msra.mxu0 %v153_v28 }
  0x25   :  { %155 = vmatprep.subr.bf16.mxu0 %v190_v3 }
  0x28   :  { %157 = vmatpush1.bf16.msra.mxu0 %v156_v31 }
  0x29   :  { %158 = vmatprep.subr.bf16.mxu0 %v190_v3 }
  0x2c   :  { %160 = vmatpush1.bf16.msra.mxu0 %v159_v34 }
  0x2d   :  { %161 = vmatprep.subr.bf16.mxu0 %v190_v3 }
  0x30   :  { %163 = vmatpush1.bf16.msra.mxu0 %v162_v37 }
  0x33   :  { %107 = vmatmul.mubr.f32.vlgmr.msra.gmra.mrb[0].mxu0 %v12_v38 }
 0x106   :  { %v108_v39 = vpop.f32.mrb[0].mxu0 }
 0x107   :  { %112 = vst.msk [vmem:[#allocation2] sm:$0xff] %vm38_vm0, %v108_v39  ;;  %v110_v40 = vpop.f32.mrb[1].mxu0 }
 0x108   :  { %177 = shalt.err (!%p174_p4)
}
 0x109   :  { %s178_s9 = scalar_lea.hbm %s301_s2, 128 }
 0x10a   :  { %p179_p5 = scmp.ne.s32.totalorder %s301_s2, %s178_s9  ;;  %p182_p6 = scmp.lt.u32.totalorder %s178_s9, %s301_s2 }
 0x10c   :  { %p184_p7 = pnand %p182_p6, %p179_p5 }
 0x10e   :  { %187 = shalt.err (!%p184_p7)
}
 0x10f   :  { %122 = dma.vmem_to_hbm [thread:$0]  %s120_s6, 128, %s301_s2, [#allocation3]  }
 0x110   :  { %188 = dma.done.wait [#allocation3], 128  }
 0x111   :  { %189 = vsyncadd [#allocation3], 4294967168 }
 0x112   :  { %126 = vsyncpa [#allocation3], 1 }

</bundles_post_ra>
